<compile_context>
chip_gen: v7x
topology: tpu7x:2x2x1
jax: 0.10.0
libtpu: 0.0.40
codegen_flags: <defaults>
</compile_context>

<pallas_src>
import functools

import jax
import jax.numpy as jnp
from jax.experimental import pallas as pl
from jax.experimental.pallas import tpu as pltpu


def _round_up(x, m):
    return ((x + m - 1) // m) * m


def _hoi_kernel(x_ref, w1_ref, b1_ref, w2_ref, b2_ref, out_ref, *,
                num_act, num_obj):
    # Cast activations to the matmul dtype in-kernel (no wrapper HBM pass).
    x = x_ref[...].astype(w1_ref.dtype)                             # (tm, E)

    # Fused first matmul over all four heads (MXU, f32 accumulation).
    h = jnp.dot(x, w1_ref[...], preferred_element_type=jnp.float32)
    h = jnp.maximum(h + b1_ref[...], 0.0)                           # (tm, 4H)

    # Fused block-diagonal second matmul, lane-dense width P.
    y = jnp.dot(h.astype(w2_ref.dtype), w2_ref[...],
                preferred_element_type=jnp.float32)
    y = y + b2_ref[...]                                             # (tm, P)

    # Column layout: [bh(4) | bo(4) | phoi(A) | pobj(O) | zero pad].
    # Masks built at (1, P): one vreg of VALU work, broadcast in the selects.
    P = y.shape[-1]
    col = jax.lax.broadcasted_iota(jnp.int32, (1, P), 1)
    phoi_lo = 8
    pobj_lo = 8 + num_act
    pobj_hi = pobj_lo + num_obj
    box_mask = col < phoi_lo
    phoi_mask = (col >= phoi_lo) & (col < pobj_lo)
    pobj_mask = (col >= pobj_lo) & (col < pobj_hi)

    # Masked, max-stabilized softmax over the pobj columns.  The shift is the
    # row max, so max(e) == 1 and the max-obj-confidence is exactly inv_s
    # (the old jnp.max(e) cross-lane reduction was dead work).
    masked = jnp.where(pobj_mask, y, jnp.float32(-1e30))
    e = jnp.exp(masked - jnp.max(masked, axis=-1, keepdims=True))   # 0 off-mask
    inv_s = pl.reciprocal(jnp.sum(e, axis=-1, keepdims=True), approx=True)

    # Sigmoid heads after the reductions (shorter f32 live ranges); phoi
    # columns are scaled by the max object confidence (= inv_s).
    sig = jax.nn.sigmoid(y)
    out = jnp.where(pobj_mask, e * inv_s,
          jnp.where(phoi_mask, sig * inv_s,
          jnp.where(box_mask, sig, 0.0)))
    out_ref[...] = out.astype(out_ref.dtype)


def init_params(key, embed_size, ff_hid_dim, num_act_classes, num_obj_classes):
    """Deterministic synthetic parameters. Weights stored (in_dim, out_dim)."""
    dims = {"bh": 4, "bo": 4, "phoi": num_act_classes, "pobj": num_obj_classes}
    params = {}
    for name, out_dim in dims.items():
        key, k1, k2, k3, k4 = jax.random.split(key, 5)
        w1 = jax.random.normal(k1, (embed_size, ff_hid_dim), jnp.float32) * 0.05
        b1 = jax.random.normal(k2, (1, ff_hid_dim), jnp.float32) * 0.05
        w2 = jax.random.normal(k3, (ff_hid_dim, out_dim), jnp.float32) * 0.05
        b2 = jax.random.normal(k4, (1, out_dim), jnp.float32) * 0.05
        params[name] = (w1, b1, w2, b2)
    return params


def pack_params(params, num_act_classes, num_obj_classes,
                matmul_dtype=jnp.bfloat16):
    """Pack 4 heads into (E,4H), (1,4H), block-diag (4H,P), (1,P) arrays."""
    heads = ("bh", "bo", "phoi", "pobj")
    out_dims = (4, 4, num_act_classes, num_obj_classes)
    E, H = params["bh"][0].shape
    P = _round_up(sum(out_dims), 128)

    w1cat = jnp.concatenate([params[h][0] for h in heads], axis=1)   # (E, 4H)
    b1cat = jnp.concatenate([params[h][1] for h in heads], axis=1)   # (1, 4H)

    w2blk = jnp.zeros((4 * H, P), jnp.float32)
    b2cat = jnp.zeros((1, P), jnp.float32)
    col = 0
    for i, h in enumerate(heads):
        w2, b2 = params[h][2], params[h][3]
        w2blk = w2blk.at[i * H:(i + 1) * H, col:col + out_dims[i]].set(w2)
        b2cat = b2cat.at[:, col:col + out_dims[i]].set(b2)
        col += out_dims[i]

    return (w1cat.astype(matmul_dtype), b1cat.astype(jnp.float32),
            w2blk.astype(matmul_dtype), b2cat.astype(jnp.float32))


def _choose_tm(N, E, H4, P, tm_req):
    """Pick the row-tile size (always a multiple of 8)."""
    N8 = _round_up(max(N, 1), 8)
    if tm_req is not None:
        return max(8, min(_round_up(tm_req, 8), N8))
    # Small problems: a single grid step (no per-step ~0.35us overhead).
    if N8 <= 512:
        return N8
    # Large problems: big tiles to amortize per-step overhead, but keep >=2
    # grid steps so the "parallel" grid axis shards across v7x's two
    # TensorCores, and keep the f32 working set comfortably inside VMEM.
    tm = 1024
    tm = min(tm, _round_up(-(-N8 // 2), 8))          # at least 2 steps
    row_bytes = 4 * (E + H4 + 3 * P)                 # x, h, y + epilogue temps
    vmem_budget = 8 * 1024 * 1024
    tm = min(tm, max(8, (vmem_budget // row_bytes) // 8 * 8))
    return max(tm, 8)


@functools.partial(
    jax.jit,
    static_argnames=("num_act_classes", "num_obj_classes", "tm", "out_dtype",
                     "return_packed"))
def hoi_prediction(decoder_output, packed, *, num_act_classes, num_obj_classes,
                   tm=None, out_dtype=jnp.bfloat16, return_packed=False):
    w1cat, b1cat, w2blk, b2cat = packed
    B, Nq, E = decoder_output.shape
    H4 = w1cat.shape[1]
    P = w2blk.shape[1]
    A, O = num_act_classes, num_obj_classes
    N = B * Nq

    tm_ = _choose_tm(N, E, H4, P, tm)
    N_pad = _round_up(N, tm_)

    # f32 activations are fed straight in; the bf16 cast happens in-kernel.
    x = decoder_output.reshape(N, E)
    if N_pad != N:
        x = jnp.pad(x, ((0, N_pad - N), (0, 0)))

    const = lambda shape: pl.BlockSpec(shape, lambda i: (0,) * len(shape))

    out_itemsize = jnp.dtype(out_dtype).itemsize
    bytes_in = (w1cat.size * w1cat.dtype.itemsize
                + w2blk.size * w2blk.dtype.itemsize
                + (b1cat.size + b2cat.size) * 4
                + N_pad * E * x.dtype.itemsize)
    cost = pl.CostEstimate(
        flops=2 * N_pad * (E * H4 + H4 * P),
        transcendentals=N_pad * (P + O),          # sigmoids + softmax exps
        bytes_accessed=bytes_in + N_pad * P * out_itemsize,
    )

    out = pl.pallas_call(
        functools.partial(_hoi_kernel, num_act=A, num_obj=O),
        out_shape=jax.ShapeDtypeStruct((N_pad, P), out_dtype),
        grid_spec=pltpu.PrefetchScalarGridSpec(
            num_scalar_prefetch=0,
            grid=(N_pad // tm_,),
            in_specs=[
                pl.BlockSpec((tm_, E), lambda i: (i, 0)),   # activation row tile
                const((E, H4)), const((1, H4)),             # fused W1 / b1
                const((H4, P)), const((1, P)),              # block-diag W2 / b2
            ],
            out_specs=pl.BlockSpec((tm_, P), lambda i: (i, 0)),
        ),
        compiler_params=pltpu.CompilerParams(
            dimension_semantics=("parallel",),
        ),
        cost_estimate=cost,
    )(x, w1cat, b1cat, w2blk, b2cat)

    out = out[:N]
    if return_packed:
        # Lane-dense (N, P) slab, columns [bh(4)|bo(4)|phoi(A)|pobj(O)|pad].
        return out

    bh = out[:, 0:4].reshape(B, Nq, 4)
    bo = out[:, 4:8].reshape(B, Nq, 4)
    phoi = out[:, 8:8 + A].reshape(B, Nq, A)
    pobj = out[:, 8 + A:8 + A + O].reshape(B, Nq, O)
    return {
        "pred_obj_logits": pobj,
        "pred_verb_logits": phoi,
        "pred_sub_boxes": bh,
        "pred_obj_boxes": bo,
    }


def _reference(decoder_output, params):
    """Pure-JAX (f32) reference mirroring the PyTorch forward."""
    def ffn(x, p):
        w1, b1, w2, b2 = p
        return jnp.maximum(x @ w1 + b1, 0.0) @ w2 + b2

    x = decoder_output.astype(jnp.float32)
    bh = jax.nn.sigmoid(ffn(x, params["bh"]))
    bo = jax.nn.sigmoid(ffn(x, params["bo"]))
    phoi = jax.nn.sigmoid(ffn(x, params["phoi"]))
    pobj = jax.nn.softmax(ffn(x, params["pobj"]), axis=-1)
    phoi = phoi * jnp.max(pobj, axis=-1, keepdims=True)
    return {
        "pred_obj_logits": pobj,
        "pred_verb_logits": phoi,
        "pred_sub_boxes": bh,
        "pred_obj_boxes": bo,
    }


if __name__ == "__main__":
    # Small shapes consistent with the module's forward (B, Nq, embed_size).
    # Nq=50 makes B*Nq=100 (not a multiple of 8) to exercise row padding.
    B, Nq, E = 2, 50, 64
    FF_HID = 128
    NUM_ACT = 29
    NUM_OBJ = 12

    key = jax.random.PRNGKey(0)
    key, pk, xk = jax.random.split(key, 3)
    params = init_params(pk, E, FF_HID, NUM_ACT, NUM_OBJ)
    packed = pack_params(params, NUM_ACT, NUM_OBJ)
    decoder_output = jax.random.normal(xk, (B, Nq, E), jnp.float32)

    # Default tm: the tile chooser collapses this small problem to a single
    # grid step (per the perf review), so no explicit tm is passed.
    out = hoi_prediction(decoder_output, packed,
                         num_act_classes=NUM_ACT, num_obj_classes=NUM_OBJ)
    jax.block_until_ready(out)

    ref = _reference(decoder_output, params)
    for k in out:
        assert out[k].shape == ref[k].shape, (k, out[k].shape, ref[k].shape)
        err = float(jnp.max(jnp.abs(out[k].astype(jnp.float32) - ref[k])))
        # bf16 matmuls + approx reciprocal + bf16 output vs f32 reference.
        assert err < 2e-2, (k, err)

    print("KERNEL_OK")
</pallas_src>

<mosaic_0001>
module attributes {stable_mosaic.version = 11 : i64} {
  func.func @_hoi_kernel(%arg0: i32, %arg1: memref<104x64xf32, #tpu.memory_space<vmem>>, %arg2: memref<64x512xbf16, #tpu.memory_space<vmem>>, %arg3: memref<1x512xf32, #tpu.memory_space<vmem>>, %arg4: memref<512x128xbf16, #tpu.memory_space<vmem>>, %arg5: memref<1x128xf32, #tpu.memory_space<vmem>>, %arg6: memref<104x128xbf16, #tpu.memory_space<vmem>>) attributes {dimension_semantics = [#tpu.dimension_semantics<parallel>], iteration_bounds = array<i64: 1>, scalar_prefetch = 0 : i64, scratch_operands = 0 : i64, tpu.core_type = #tpu.core_type<tc>, window_params = [{transform_indices = @transform_0, window_bounds = array<i64: 104, 64>}, {pipeline_mode = #tpu.pipeline_mode<synchronous>, transform_indices = @transform_1, window_bounds = array<i64: 64, 512>}, {pipeline_mode = #tpu.pipeline_mode<synchronous>, transform_indices = @transform_2, window_bounds = array<i64: 1, 512>}, {pipeline_mode = #tpu.pipeline_mode<synchronous>, transform_indices = @transform_3, window_bounds = array<i64: 512, 128>}, {pipeline_mode = #tpu.pipeline_mode<synchronous>, transform_indices = @transform_4, window_bounds = array<i64: 1, 128>}, {transform_indices = @transform_5, window_bounds = array<i64: 104, 128>}]} {
    %c0 = arith.constant 0 : index
    %c0_0 = arith.constant 0 : index
    %0 = vector.load %arg1[%c0, %c0_0] : memref<104x64xf32, #tpu.memory_space<vmem>>, vector<104x64xf32>
    %1 = arith.truncf %0 : vector<104x64xf32> to vector<104x64xbf16>
    %c0_1 = arith.constant 0 : index
    %c0_2 = arith.constant 0 : index
    %2 = vector.load %arg2[%c0_1, %c0_2] : memref<64x512xbf16, #tpu.memory_space<vmem>>, vector<64x512xbf16>
    %cst = arith.constant dense<0.000000e+00> : vector<104x512xf32>
    %3 = tpu.matmul %1, %2, %cst {dimension_numbers = #tpu.dot_dimension_numbers<[1], [0], [0], [1], [0, 0, 1, 1], [], []>} : vector<104x64xbf16>, vector<64x512xbf16>, vector<104x512xf32> -> vector<104x512xf32>
    %c0_3 = arith.constant 0 : index
    %c0_4 = arith.constant 0 : index
    %4 = vector.load %arg3[%c0_3, %c0_4] : memref<1x512xf32, #tpu.memory_space<vmem>>, vector<1x512xf32>
    %5 = vector.broadcast %4 : vector<1x512xf32> to vector<104x512xf32>
    %6 = arith.addf %3, %5 : vector<104x512xf32>
    %cst_5 = arith.constant 0.000000e+00 : f32
    %7 = vector.broadcast %cst_5 : f32 to vector<104x512xf32>
    %8 = arith.maximumf %6, %7 : vector<104x512xf32>
    %9 = arith.truncf %8 : vector<104x512xf32> to vector<104x512xbf16>
    %c0_6 = arith.constant 0 : index
    %c0_7 = arith.constant 0 : index
    %10 = vector.load %arg4[%c0_6, %c0_7] : memref<512x128xbf16, #tpu.memory_space<vmem>>, vector<512x128xbf16>
    %cst_8 = arith.constant dense<0.000000e+00> : vector<104x128xf32>
    %11 = tpu.matmul %9, %10, %cst_8 {dimension_numbers = #tpu.dot_dimension_numbers<[1], [0], [0], [1], [0, 0, 1, 1], [], []>} : vector<104x512xbf16>, vector<512x128xbf16>, vector<104x128xf32> -> vector<104x128xf32>
    %c0_9 = arith.constant 0 : index
    %c0_10 = arith.constant 0 : index
    %12 = vector.load %arg5[%c0_9, %c0_10] : memref<1x128xf32, #tpu.memory_space<vmem>>, vector<1x128xf32>
    %13 = vector.broadcast %12 : vector<1x128xf32> to vector<104x128xf32>
    %14 = arith.addf %11, %13 : vector<104x128xf32>
    %15 = tpu.iota {dimensions = array<i32: 1>} : vector<1x128xi32>
    %c8_i32 = arith.constant 8 : i32
    %16 = vector.broadcast %c8_i32 : i32 to vector<1x128xi32>
    %17 = arith.cmpi slt, %15, %16 : vector<1x128xi32>
    %c8_i32_11 = arith.constant 8 : i32
    %18 = vector.broadcast %c8_i32_11 : i32 to vector<1x128xi32>
    %19 = arith.cmpi sge, %15, %18 : vector<1x128xi32>
    %c37_i32 = arith.constant 37 : i32
    %20 = vector.broadcast %c37_i32 : i32 to vector<1x128xi32>
    %21 = arith.cmpi slt, %15, %20 : vector<1x128xi32>
    %22 = arith.andi %19, %21 : vector<1x128xi1>
    %c37_i32_12 = arith.constant 37 : i32
    %23 = vector.broadcast %c37_i32_12 : i32 to vector<1x128xi32>
    %24 = arith.cmpi sge, %15, %23 : vector<1x128xi32>
    %c49_i32 = arith.constant 49 : i32
    %25 = vector.broadcast %c49_i32 : i32 to vector<1x128xi32>
    %26 = arith.cmpi slt, %15, %25 : vector<1x128xi32>
    %27 = arith.andi %24, %26 : vector<1x128xi1>
    %cst_13 = arith.constant -1.000000e+30 : f32
    %28 = vector.shape_cast %27 : vector<1x128xi1> to vector<1x128xi1>
    %29 = vector.broadcast %28 : vector<1x128xi1> to vector<104x128xi1>
    %30 = vector.broadcast %cst_13 : f32 to vector<104x128xf32>
    %31 = arith.select %29, %14, %30 : vector<104x128xi1>, vector<104x128xf32>
    %cst_14 = arith.constant dense<0xFF800000> : vector<104xf32>
    %32 = vector.multi_reduction <maximumf>, %31, %cst_14 [1] : vector<104x128xf32> to vector<104xf32>
    %33 = vector.shape_cast %32 : vector<104xf32> to vector<104x1xf32>
    %34 = vector.broadcast %33 : vector<104x1xf32> to vector<104x128xf32>
    %35 = arith.subf %31, %34 : vector<104x128xf32>
    %36 = math.exp %35 : vector<104x128xf32>
    %cst_15 = arith.constant dense<0.000000e+00> : vector<104xf32>
    %37 = vector.multi_reduction <add>, %36, %cst_15 [1] : vector<104x128xf32> to vector<104xf32>
    %38 = vector.shape_cast %37 : vector<104xf32> to vector<104x1xf32>
    %39 = tpu.reciprocal %38 {approx = true} : vector<104x1xf32> -> vector<104x1xf32>
    %40 = arith.negf %14 : vector<104x128xf32>
    %41 = math.exp %40 : vector<104x128xf32>
    %cst_16 = arith.constant 1.000000e+00 : f32
    %42 = vector.broadcast %cst_16 : f32 to vector<104x128xf32>
    %43 = arith.addf %42, %41 : vector<104x128xf32>
    %44 = arith.divf %42, %43 : vector<104x128xf32>
    %45 = vector.broadcast %39 : vector<104x1xf32> to vector<104x128xf32>
    %46 = arith.mulf %36, %45 : vector<104x128xf32>
    %47 = vector.broadcast %39 : vector<104x1xf32> to vector<104x128xf32>
    %48 = arith.mulf %44, %47 : vector<104x128xf32>
    %cst_17 = arith.constant 0.000000e+00 : f32
    %49 = vector.shape_cast %17 : vector<1x128xi1> to vector<1x128xi1>
    %50 = vector.broadcast %49 : vector<1x128xi1> to vector<104x128xi1>
    %51 = vector.broadcast %cst_17 : f32 to vector<104x128xf32>
    %52 = arith.select %50, %44, %51 : vector<104x128xi1>, vector<104x128xf32>
    %53 = vector.shape_cast %22 : vector<1x128xi1> to vector<1x128xi1>
    %54 = vector.broadcast %53 : vector<1x128xi1> to vector<104x128xi1>
    %55 = arith.select %54, %48, %52 : vector<104x128xi1>, vector<104x128xf32>
    %56 = vector.shape_cast %27 : vector<1x128xi1> to vector<1x128xi1>
    %57 = vector.broadcast %56 : vector<1x128xi1> to vector<104x128xi1>
    %58 = arith.select %57, %46, %55 : vector<104x128xi1>, vector<104x128xf32>
    %59 = arith.truncf %58 : vector<104x128xf32> to vector<104x128xbf16>
    %c0_18 = arith.constant 0 : index
    %c0_19 = arith.constant 0 : index
    %60 = vector.load %arg6[%c0_18, %c0_19] : memref<104x128xbf16, #tpu.memory_space<vmem>>, vector<104x128xbf16>
    tpu.vector_store %arg6[%c0_18, %c0_19], %59 {strides = array<i32>} : memref<104x128xbf16, #tpu.memory_space<vmem>>, vector<104x128xbf16>,
    return
  }
  func.func @transform_0(%arg0: i32) -> (i32, i32) {
    %c0_i32 = arith.constant 0 : i32
    %c0_i32_0 = arith.constant 0 : i32
    return %arg0, %c0_i32 : i32, i32
  }
  func.func @transform_1(%arg0: i32) -> (i32, i32) {
    %c0_i32 = arith.constant 0 : i32
    %c0_i32_0 = arith.constant 0 : i32
    %c0_i32_1 = arith.constant 0 : i32
    return %c0_i32, %c0_i32_0 : i32, i32
  }
  func.func @transform_2(%arg0: i32) -> (i32, i32) {
    %c0_i32 = arith.constant 0 : i32
    %c0_i32_0 = arith.constant 0 : i32
    %c0_i32_1 = arith.constant 0 : i32
    return %c0_i32, %c0_i32_0 : i32, i32
  }
  func.func @transform_3(%arg0: i32) -> (i32, i32) {
    %c0_i32 = arith.constant 0 : i32
    %c0_i32_0 = arith.constant 0 : i32
    %c0_i32_1 = arith.constant 0 : i32
    return %c0_i32, %c0_i32_0 : i32, i32
  }
  func.func @transform_4(%arg0: i32) -> (i32, i32) {
    %c0_i32 = arith.constant 0 : i32
    %c0_i32_0 = arith.constant 0 : i32
    %c0_i32_1 = arith.constant 0 : i32
    return %c0_i32, %c0_i32_0 : i32, i32
  }
  func.func @transform_5(%arg0: i32) -> (i32, i32) {
    %c0_i32 = arith.constant 0 : i32
    %c0_i32_0 = arith.constant 0 : i32
    return %arg0, %c0_i32 : i32, i32
  }
}

</mosaic_0001>

<bundles_post_ra>
// kernel: hoi_prediction.1
= control target key start
LH: loop header
LB: loop body
LE: loop exit
PB: predicated region body
PF: predicated region fallthrough
CT: control target
= control target key end

     0   :  { %v1661_v1 = vmov 0   ;;  %vm159_vm0 = vcmask 523264   ;;  %s2282_s1 = inlined_call_operand.vmem [shape: bf16[64,512], index: 1, kind: input, shape index: {}]   ;;  %s2283_s0 = inlined_call_operand.vmem [shape: f32[104,64], index: 0, kind: input, shape index: {}]   ;;  %s2284_s3 = inlined_call_operand.vmem [shape: bf16[512,128], index: 3, kind: input, shape index: {}]   ;;  %s2285_s2 = inlined_call_operand.vmem [shape: f32[1,512], index: 2, kind: input, shape index: {}]   ;;  %s2286_s4 = inlined_call_operand.vmem [shape: f32[1,128], index: 4, kind: input, shape index: {}]   ;;  %s2287_s5 = inlined_call_operand.vmem [shape: bf16[104,128], index: 5, kind: output, shape index: {}]  }
   0x1   :  { %v1501_v0 = vld [vmem:[%s2282_s1 + $0x4] ss:$16 sps:$4 sm:$0xff]   ;;  %213 = vmatprep.mubr.bf16.mxu0 %v1661_v1  ;;  %314 = vmatprep.mubr.bf16.mxu1 %v1661_v1  ;;  %v1503_v2 = vld [vmem:[%s2282_s1 + $0xc] ss:$16 sps:$4 sm:$0xff]   ;;  %v1505_v3 = vld [vmem:[%s2282_s1] ss:$16 sps:$4 sm:$0xff]  }
   0x2   :  { %181 = vmatprep.subr.bf16.mxu0 %v1501_v0  ;;  %v1506_v4 = vld [vmem:[%s2282_s1 + $0x8] ss:$16 sps:$4 sm:$0xff]   ;;  %282 = vmatprep.subr.bf16.mxu1 %v1503_v2  ;;  %v1507_v5 = vld [vmem:[%s2282_s1 + $0x24] ss:$16 sps:$4 sm:$0xff]   ;;  %v1509_v6 = vld [vmem:[%s2282_s1 + $0x2c] ss:$16 sps:$4 sm:$0xff]  }
   0x3   :  { %182 = vmatpush1.bf16.msra.mxu0 %v1505_v3  ;;  %283 = vmatpush1.bf16.msra.mxu1 %v1506_v4  ;;  %v1511_v7 = vld [vmem:[%s2282_s1 + $0x20] ss:$16 sps:$4 sm:$0xff]   ;;  %v1512_v8 = vld [vmem:[%s2282_s1 + $0x28] ss:$16 sps:$4 sm:$0xff]   ;;  %v1513_v9 = vld [vmem:[%s2282_s1 + $0x44] ss:$16 sps:$4 sm:$0xff]  }
   0x4   :  { %183 = vmatprep.subr.bf16.mxu0 %v1507_v5  ;;  %284 = vmatprep.subr.bf16.mxu1 %v1509_v6  ;;  %v1515_v10 = vld [vmem:[%s2282_s1 + $0x4c] ss:$16 sps:$4 sm:$0xff]   ;;  %v1517_v11 = vld [vmem:[%s2282_s1 + $0x40] ss:$16 sps:$4 sm:$0xff]   ;;  %v1518_v12 = vld [vmem:[%s2282_s1 + $0x48] ss:$16 sps:$4 sm:$0xff]   ;;  %v59_v5 = vlaneseq }
   0x5   :  { %v1519_v13 = vld [vmem:[%s2282_s1 + $0x64] ss:$16 sps:$4 sm:$0xff]   ;;  %v1521_v14 = vld [vmem:[%s2282_s1 + $0x6c] ss:$16 sps:$4 sm:$0xff]   ;;  %v1523_v15 = vld [vmem:[%s2282_s1 + $0x60] ss:$16 sps:$4 sm:$0xff]  }
   0x6   :  { %v1524_v16 = vld [vmem:[%s2282_s1 + $0x68] ss:$16 sps:$4 sm:$0xff]   ;;  %v21_v17 = vld [vmem:[%s2283_s0] sm:$0xff]  ;;  %v23_v23 = vld [vmem:[%s2283_s0 + $0x10] sm:$0xff]  ;;  %v60_v6 = vshrl.u32 %v59_v5, 7 }
   0x7   :  { %184 = vmatpush1.bf16.msra.mxu0 %v1511_v7  ;;  %285 = vmatpush1.bf16.msra.mxu1 %v1512_v8  ;;  %v22_v18 = vld [vmem:[%s2283_s0 + $0x8] sm:$0xff]  ;;  %v1525_v20 = vld [vmem:[%s2284_s3 + $0x40] sm:$0xff]   ;;  %v24_v24 = vld [vmem:[%s2283_s0 + $0x18] sm:$0xff] }
   0x8   :  { %185 = vmatprep.subr.bf16.mxu0 %v1513_v9  ;;  %286 = vmatprep.subr.bf16.mxu1 %v1515_v10  ;;  %v34_v19 = vpack.c.bf16 %v22_v18, %v21_v17  ;;  %v1526_v21 = vld [vmem:[%s2284_s3] sm:$0xff]   ;;  %v1529_v26 = vld [vmem:[%s2284_s3 + $0x48] sm:$0xff]   ;;  %v35_v30 = vpack.c.bf16 %v24_v24, %v23_v23  ;;  %v1533_v31 = vld [vmem:[%s2284_s3 + $0x50] sm:$0xff]   ;;  %v61_v7 = vsub.s32 0, %v60_v6  ;;  %v69_v8 = vsub.s32 2, %v60_v6 }
   0x9   :  { %v1527_v22 = vld [vmem:[%s2284_s3 + $0xc0] sm:$0xff]   ;;  %v1530_v27 = vld [vmem:[%s2284_s3 + $0x8] sm:$0xff]   ;;  %v1534_v32 = vld [vmem:[%s2284_s3 + $0x10] sm:$0xff]   ;;  %v65_v10 = vsub.s32 1, %v60_v6 }
   0xa   :  { %v1528_v25 = vld [vmem:[%s2284_s3 + $0x80] sm:$0xff]   ;;  %v1531_v28 = vld [vmem:[%s2284_s3 + $0xc8] sm:$0xff]   ;;  %v1535_v33 = vld [vmem:[%s2284_s3 + $0xd0] sm:$0xff]  }
   0xb   :  { %186 = vmatpush1.bf16.msra.mxu0 %v1517_v11  ;;  %287 = vmatpush1.bf16.msra.mxu1 %v1518_v12  ;;  %v1532_v29 = vld [vmem:[%s2284_s3 + $0x88] sm:$0xff]   ;;  %v25_v34 = vld [vmem:[%s2283_s0 + $0x20] sm:$0xff]  ;;  %v1536_v36 = vld [vmem:[%s2284_s3 + $0x90] sm:$0xff]   ;;  %v73_v11 = vsub.s32 3, %v60_v6 }
   0xc   :  { %187 = vmatprep.subr.bf16.mxu0 %v1519_v13  ;;  %288 = vmatprep.subr.bf16.mxu1 %v1521_v14  ;;  %v26_v35 = vld [vmem:[%s2283_s0 + $0x28] sm:$0xff]  ;;  %v1537_v37 = vld [vmem:[%s2284_s3 + $0x58] sm:$0xff]   ;;  %v1541_v42 = vld [vmem:[%s2284_s3 + $0x60] sm:$0xff]  }
   0xd   :  { %v1538_v38 = vld [vmem:[%s2284_s3 + $0x18] sm:$0xff]   ;;  %v36_v41 = vpack.c.bf16 %v26_v35, %v25_v34  ;;  %v1542_v43 = vld [vmem:[%s2284_s3 + $0x20] sm:$0xff]   ;;  %v27_v45 = vld [vmem:[%s2283_s0 + $0x30] sm:$0xff] }
   0xe   :  { %v1539_v39 = vld [vmem:[%s2284_s3 + $0xd8] sm:$0xff]   ;;  %v1543_v44 = vld [vmem:[%s2284_s3 + $0xe0] sm:$0xff]   ;;  %v1545_v48 = vld [vmem:[%s2284_s3 + $0x68] sm:$0xff]  }
   0xf   :  { %188 = vmatpush1.bf16.msra.mxu0 %v1523_v15  ;;  %289 = vmatpush1.bf16.msra.mxu1 %v1524_v16  ;;  %v1540_v40 = vld [vmem:[%s2284_s3 + $0x98] sm:$0xff]   ;;  %v1544_v47 = vld [vmem:[%s2284_s3 + $0xa0] sm:$0xff]   ;;  %v1546_v49 = vld [vmem:[%s2284_s3 + $0x28] sm:$0xff]  }
  0x10   :  { %1384 = vmatprep.subr.bf16.mxu0 %v1525_v20  ;;  %1442 = vmatprep.subr.bf16.mxu1 %v1527_v22  ;;  %v28_v46 = vld [vmem:[%s2283_s0 + $0x38] sm:$0xff]  ;;  %v1547_v50 = vld [vmem:[%s2284_s3 + $0xe8] sm:$0xff]   ;;  %v1549_v53 = vld [vmem:[%s2284_s3 + $0x70] sm:$0xff]  }
  0x11   :  { %v1548_v51 = vld [vmem:[%s2284_s3 + $0xa8] sm:$0xff]   ;;  %v37_v52 = vpack.c.bf16 %v28_v46, %v27_v45  ;;  %v1550_v54 = vld [vmem:[%s2284_s3 + $0x30] sm:$0xff]   ;;  %v29_v56 = vld [vmem:[%s2283_s0 + $0x40] sm:$0xff] }
  0x12   :  { %1263 = vmatmul.mubr.msk.bf16.vlgmr.msra.gmra.mrb[0].mxu0 %vm159_vm0, %v34_v19  ;;  %1270 = vmatmul.mubr.msk.bf16.vlgmr.msra.gmra.mrb[0].mxu1 %vm159_vm0, %v34_v19  ;;  %v1551_v55 = vld [vmem:[%s2284_s3 + $0xf0] sm:$0xff]   ;;  %v30_v58 = vld [vmem:[%s2283_s0 + $0x48] sm:$0xff]  ;;  %v32_v61 = vld [vmem:[%s2283_s0 + $0x58] sm:$0xff] }
  0x13   :  { %223 = vmatprep.mubr.bf16.mxu0 %v1661_v1  ;;  %324 = vmatprep.mubr.bf16.mxu1 %v1661_v1  ;;  %v1552_v57 = vld [vmem:[%s2284_s3 + $0xb0] sm:$0xff]   ;;  %v38_v59 = vpack.c.bf16 %v30_v58, %v29_v56  ;;  %v33_v63 = vld [vmem:[%s2283_s0 + $0x60] sm:$0xff]  ;;  %v1553_v2 = vld [vmem:[%s2284_s3 + $0x78] sm:$0xff]  }
  0x14   :  { %1385 = vmatpush3.bf16.msra.mxu0 %v1526_v21  ;;  %1443 = vmatpush3.bf16.msra.mxu1 %v1528_v25  ;;  %v31_v60 = vld [vmem:[%s2283_s0 + $0x50] sm:$0xff]  ;;  %v40_v0 = vpack.c.bf16 %v33_v63, %v33_v63  ;;  %v1555_v3 = vld [vmem:[%s2284_s3 + $0xf8] sm:$0xff]   ;;  %v57_v9 = vld [vmem:[%s2285_s2] sm:$0xf] }
  0x15   :  { %1386 = vmatprep.subr.bf16.mxu0 %v1529_v26  ;;  %1444 = vmatprep.subr.bf16.mxu1 %v1531_v28  ;;  %v39_v62 = vpack.c.bf16 %v32_v61, %v31_v60  ;;  %v1554_v4 = vld [vmem:[%s2284_s3 + $0x38] sm:$0xff]   ;;  %v1907_v12 = vrot.slane %v57_v9, %v61_v7  ;;  %v1909_v13 = vrot.slane %v57_v9, %v69_v8 }
  0x16   :  { %v1911_v14 = vrot.slane %v57_v9, %v65_v10  ;;  %v1913_v15 = vrot.slane %v57_v9, %v73_v11 }
  0x18   :  { %1387 = vmatpush3.bf16.msra.mxu0 %v1530_v27  ;;  %1445 = vmatpush3.bf16.msra.mxu1 %v1532_v29 }
  0x19   :  { %1388 = vmatprep.subr.bf16.mxu0 %v1533_v31  ;;  %1446 = vmatprep.subr.bf16.mxu1 %v1535_v33 }
  0x1a   :  { %1264 = vmatmul.mubr.msk.bf16.gmra.mrb[4].mxu0 %vm159_vm0, %v35_v30  ;;  %1271 = vmatmul.mubr.msk.bf16.gmra.mrb[4].mxu1 %vm159_vm0, %v35_v30 }
  0x1b   :  { %233 = vmatprep.mubr.bf16.mxu0 %v1661_v1  ;;  %334 = vmatprep.mubr.bf16.mxu1 %v1661_v1 }
  0x1c   :  { %1389 = vmatpush3.bf16.msra.mxu0 %v1534_v32  ;;  %1447 = vmatpush3.bf16.msra.mxu1 %v1536_v36 }
  0x1d   :  { %1390 = vmatprep.subr.bf16.mxu0 %v1537_v37  ;;  %1448 = vmatprep.subr.bf16.mxu1 %v1539_v39 }
  0x20   :  { %1391 = vmatpush3.bf16.msra.mxu0 %v1538_v38  ;;  %1449 = vmatpush3.bf16.msra.mxu1 %v1540_v40 }
  0x21   :  { %1392 = vmatprep.subr.bf16.mxu0 %v1541_v42  ;;  %1450 = vmatprep.subr.bf16.mxu1 %v1543_v44 }
  0x22   :  { %1265 = vmatmul.mubr.msk.bf16.gmra.mrb[8].mxu0 %vm159_vm0, %v36_v41  ;;  %1272 = vmatmul.mubr.msk.bf16.gmra.mrb[8].mxu1 %vm159_vm0, %v36_v41 }
  0x23   :  { %243 = vmatprep.mubr.bf16.mxu0 %v1661_v1  ;;  %344 = vmatprep.mubr.bf16.mxu1 %v1661_v1 }
  0x24   :  { %1393 = vmatpush3.bf16.msra.mxu0 %v1542_v43  ;;  %1451 = vmatpush3.bf16.msra.mxu1 %v1544_v47 }
  0x25   :  { %1394 = vmatprep.subr.bf16.mxu0 %v1545_v48  ;;  %1452 = vmatprep.subr.bf16.mxu1 %v1547_v50 }
  0x28   :  { %1395 = vmatpush3.bf16.msra.mxu0 %v1546_v49  ;;  %1453 = vmatpush3.bf16.msra.mxu1 %v1548_v51 }
  0x29   :  { %1396 = vmatprep.subr.bf16.mxu0 %v1549_v53  ;;  %1454 = vmatprep.subr.bf16.mxu1 %v1551_v55 }
  0x2a   :  { %1266 = vmatmul.mubr.msk.bf16.gmra.mrb[12].mxu0 %vm159_vm0, %v37_v52  ;;  %1273 = vmatmul.mubr.msk.bf16.gmra.mrb[12].mxu1 %vm159_vm0, %v37_v52 }
  0x2b   :  { %253 = vmatprep.mubr.bf16.mxu0 %v1661_v1  ;;  %354 = vmatprep.mubr.bf16.mxu1 %v1661_v1 }
  0x2c   :  { %1397 = vmatpush3.bf16.msra.mxu0 %v1550_v54  ;;  %1455 = vmatpush3.bf16.msra.mxu1 %v1552_v57 }
  0x2d   :  { %1398 = vmatprep.subr.bf16.mxu0 %v1553_v2  ;;  %1456 = vmatprep.subr.bf16.mxu1 %v1555_v3 }
  0x30   :  { %1399 = vmatpush3.bf16.msra.mxu0 %v1554_v4 }
  0x32   :  { %1267 = vmatmul.mubr.msk.bf16.gmra.mrb[16].mxu0 %vm159_vm0, %v38_v59  ;;  %1274 = vmatmul.mubr.msk.bf16.gmra.mrb[16].mxu1 %vm159_vm0, %v38_v59 }
  0x33   :  { %263 = vmatprep.mubr.bf16.mxu0 %v1661_v1  ;;  %364 = vmatprep.mubr.bf16.mxu1 %v1661_v1 }
  0x3a   :  { %1268 = vmatmul.mubr.msk.bf16.gmra.mrb[20].mxu0 %vm159_vm0, %v39_v62  ;;  %1275 = vmatmul.mubr.msk.bf16.gmra.mrb[20].mxu1 %vm159_vm0, %v39_v62 }
  0x3b   :  { %273 = vmatprep.mubr.bf16.mxu0 %v1661_v1  ;;  %374 = vmatprep.mubr.bf16.mxu1 %v1661_v1  ;;  %v1556_v1 = vld [vmem:[%s2284_s3 + $0xb8] sm:$0xff]  }
  0x3c   :  { %1457 = vmatpush3.bf16.msra.mxu1 %v1556_v1 }
  0x42   :  { %1269 = vmatmul.mubr.msk.bf16.gmra.mrb[24].mxu0 %vm159_vm0, %v40_v0  ;;  %1276 = vmatmul.mubr.msk.bf16.gmra.mrb[24].mxu1 %vm159_vm0, %v40_v0 }
  0xe5   :  { %v215_v16 = vpop.f32.mrb[0].mxu0  ;;  %v316_v17 = vpop.f32.mrb[0].mxu1 }
  0xe6   :  { %v216_v18 = vadd.f32 %v215_v16, %v1907_v12  ;;  %v317_v19 = vadd.f32 %v316_v17, %v1909_v13  ;;  %v217_v20 = vpop.f32.mrb[1].mxu0  ;;  %v318_v21 = vpop.f32.mrb[1].mxu1 }
  0xe7   :  { %v218_v22 = vadd.f32 %v217_v20, %v1911_v14  ;;  %v319_v23 = vadd.f32 %v318_v21, %v1913_v15  ;;  %v219_v24 = vpop.f32.mrb[2].mxu0  ;;  %v320_v25 = vpop.f32.mrb[2].mxu1 }
  0xe8   :  { %v385_v26 = vmax.f32 %v317_v19, 0.0  ;;  %v220_v27 = vadd.f32 %v219_v24, %v1907_v12  ;;  %v321_v28 = vadd.f32 %v320_v25, %v1909_v13  ;;  %v221_v29 = vpop.f32.mrb[3].mxu0  ;;  %v322_v30 = vpop.f32.mrb[3].mxu1  ;;  %v383_v34 = vmax.f32 %v216_v18, 0.0 }
  0xe9   :  { %v386_v31 = vmax.f32 %v319_v23, 0.0  ;;  %v222_v32 = vadd.f32 %v221_v29, %v1911_v14  ;;  %v323_v33 = vadd.f32 %v322_v30, %v1913_v15  ;;  %v384_v37 = vmax.f32 %v218_v22, 0.0 }
  0xea   :  { %v387_v35 = vmax.f32 %v220_v27, 0.0  ;;  %v389_v36 = vmax.f32 %v321_v28, 0.0 }
  0xeb   :  { %v388_v38 = vmax.f32 %v222_v32, 0.0  ;;  %v390_v39 = vmax.f32 %v323_v33, 0.0 }
  0xec   :  { %v435_v40 = vpack.c.bf16 %v387_v35, %v383_v34  ;;  %v437_v41 = vpack.c.bf16 %v389_v36, %v385_v26 }
  0xed   :  { %v436_v42 = vpack.c.bf16 %v388_v38, %v384_v37  ;;  %v438_v43 = vpack.c.bf16 %v390_v39, %v386_v31  ;;  %v225_v44 = vpop.f32.mrb[4].mxu0  ;;  %v326_v45 = vpop.f32.mrb[4].mxu1 }
  0xee   :  { %v226_v46 = vadd.f32 %v225_v44, %v1907_v12  ;;  %v327_v47 = vadd.f32 %v326_v45, %v1909_v13  ;;  %v227_v48 = vpop.f32.mrb[5].mxu0  ;;  %v328_v49 = vpop.f32.mrb[5].mxu1 }
  0xef   :  { %v228_v50 = vadd.f32 %v227_v48, %v1911_v14  ;;  %v329_v51 = vadd.f32 %v328_v49, %v1913_v15  ;;  %v229_v52 = vpop.f32.mrb[6].mxu0  ;;  %v330_v53 = vpop.f32.mrb[6].mxu1  ;;  %758 = vmatprep.mubr.bf16.mxu0 %v436_v42  ;;  %846 = vmatprep.mubr.bf16.mxu1 %v438_v43 }
  0xf0   :  { %v393_v54 = vmax.f32 %v327_v47, 0.0  ;;  %v230_v55 = vadd.f32 %v229_v52, %v1907_v12  ;;  %v331_v56 = vadd.f32 %v330_v53, %v1909_v13  ;;  %v231_v57 = vpop.f32.mrb[7].mxu0  ;;  %v332_v58 = vpop.f32.mrb[7].mxu1  ;;  %759 = vmatmul.mubr.bf16.vlgmr.msra.gmra.mrb[28].mxu0 %v435_v40  ;;  %847 = vmatmul.mubr.bf16.vlgmr.msra.gmra.mrb[28].mxu1 %v437_v41  ;;  %v391_v62 = vmax.f32 %v226_v46, 0.0 }
  0xf1   :  { %v394_v59 = vmax.f32 %v329_v51, 0.0  ;;  %v232_v60 = vadd.f32 %v231_v57, %v1911_v14  ;;  %v333_v61 = vadd.f32 %v332_v58, %v1913_v15  ;;  %v392_v2 = vmax.f32 %v228_v50, 0.0 }
  0xf2   :  { %v395_v63 = vmax.f32 %v230_v55, 0.0  ;;  %v397_v0 = vmax.f32 %v331_v56, 0.0 }
  0xf3   :  { %v396_v3 = vmax.f32 %v232_v60, 0.0  ;;  %v398_v4 = vmax.f32 %v333_v61, 0.0 }
  0xf4   :  { %v439_v1 = vpack.c.bf16 %v395_v63, %v391_v62  ;;  %v441_v6 = vpack.c.bf16 %v397_v0, %v393_v54 }
  0xf5   :  { %v440_v7 = vpack.c.bf16 %v396_v3, %v392_v2  ;;  %v442_v8 = vpack.c.bf16 %v398_v4, %v394_v59  ;;  %v235_v9 = vpop.f32.mrb[8].mxu0  ;;  %v336_v10 = vpop.f32.mrb[8].mxu1 }
  0xf6   :  { %v236_v11 = vadd.f32 %v235_v9, %v1907_v12  ;;  %v337_v16 = vadd.f32 %v336_v10, %v1909_v13  ;;  %v237_v17 = vpop.f32.mrb[9].mxu0  ;;  %v338_v18 = vpop.f32.mrb[9].mxu1 }
  0xf7   :  { %v238_v19 = vadd.f32 %v237_v17, %v1911_v14  ;;  %v339_v20 = vadd.f32 %v338_v18, %v1913_v15  ;;  %v239_v21 = vpop.f32.mrb[10].mxu0  ;;  %v340_v22 = vpop.f32.mrb[10].mxu1  ;;  %766 = vmatprep.mubr.bf16.mxu0 %v440_v7  ;;  %854 = vmatprep.mubr.bf16.mxu1 %v442_v8 }
  0xf8   :  { %v401_v23 = vmax.f32 %v337_v16, 0.0  ;;  %v240_v24 = vadd.f32 %v239_v21, %v1907_v12  ;;  %v341_v25 = vadd.f32 %v340_v22, %v1909_v13  ;;  %v241_v26 = vpop.f32.mrb[11].mxu0  ;;  %v342_v27 = vpop.f32.mrb[11].mxu1  ;;  %767 = vmatmul.mubr.bf16.gmra.mrb[32].mxu0 %v439_v1  ;;  %855 = vmatmul.mubr.bf16.gmra.mrb[32].mxu1 %v441_v6  ;;  %v399_v31 = vmax.f32 %v236_v11, 0.0 }
  0xf9   :  { %v402_v28 = vmax.f32 %v339_v20, 0.0  ;;  %v242_v29 = vadd.f32 %v241_v26, %v1911_v14  ;;  %v343_v30 = vadd.f32 %v342_v27, %v1913_v15  ;;  %v400_v34 = vmax.f32 %v238_v19, 0.0 }
  0xfa   :  { %v403_v32 = vmax.f32 %v240_v24, 0.0  ;;  %v405_v33 = vmax.f32 %v341_v25, 0.0 }
  0xfb   :  { %v404_v35 = vmax.f32 %v242_v29, 0.0  ;;  %v406_v36 = vmax.f32 %v343_v30, 0.0 }
  0xfc   :  { %v443_v37 = vpack.c.bf16 %v403_v32, %v399_v31  ;;  %v445_v38 = vpack.c.bf16 %v405_v33, %v401_v23 }
  0xfd   :  { %v444_v39 = vpack.c.bf16 %v404_v35, %v400_v34  ;;  %v446_v40 = vpack.c.bf16 %v406_v36, %v402_v28  ;;  %v245_v41 = vpop.f32.mrb[12].mxu0  ;;  %v346_v42 = vpop.f32.mrb[12].mxu1 }
  0xfe   :  { %v246_v43 = vadd.f32 %v245_v41, %v1907_v12  ;;  %v347_v44 = vadd.f32 %v346_v42, %v1909_v13  ;;  %v247_v45 = vpop.f32.mrb[13].mxu0  ;;  %v348_v46 = vpop.f32.mrb[13].mxu1 }
  0xff   :  { %v248_v47 = vadd.f32 %v247_v45, %v1911_v14  ;;  %v349_v48 = vadd.f32 %v348_v46, %v1913_v15  ;;  %v249_v49 = vpop.f32.mrb[14].mxu0  ;;  %v350_v50 = vpop.f32.mrb[14].mxu1  ;;  %774 = vmatprep.mubr.bf16.mxu0 %v444_v39  ;;  %862 = vmatprep.mubr.bf16.mxu1 %v446_v40 }
 0x100   :  { %v409_v51 = vmax.f32 %v347_v44, 0.0  ;;  %v250_v52 = vadd.f32 %v249_v49, %v1907_v12  ;;  %v351_v53 = vadd.f32 %v350_v50, %v1909_v13  ;;  %v251_v54 = vpop.f32.mrb[15].mxu0  ;;  %v352_v55 = vpop.f32.mrb[15].mxu1  ;;  %775 = vmatmul.mubr.bf16.gmra.mrb[36].mxu0 %v443_v37  ;;  %863 = vmatmul.mubr.bf16.gmra.mrb[36].mxu1 %v445_v38  ;;  %v407_v59 = vmax.f32 %v246_v43, 0.0 }
 0x101   :  { %v410_v56 = vmax.f32 %v349_v48, 0.0  ;;  %v252_v57 = vadd.f32 %v251_v54, %v1911_v14  ;;  %v353_v58 = vadd.f32 %v352_v55, %v1913_v15  ;;  %v408_v62 = vmax.f32 %v248_v47, 0.0 }
 0x102   :  { %v411_v60 = vmax.f32 %v250_v52, 0.0  ;;  %v413_v61 = vmax.f32 %v351_v53, 0.0 }
 0x103   :  { %v412_v63 = vmax.f32 %v252_v57, 0.0  ;;  %v414_v0 = vmax.f32 %v353_v58, 0.0 }
 0x104   :  { %v447_v2 = vpack.c.bf16 %v411_v60, %v407_v59  ;;  %v449_v3 = vpack.c.bf16 %v413_v61, %v409_v51 }
 0x105   :  { %v448_v4 = vpack.c.bf16 %v412_v63, %v408_v62  ;;  %v450_v1 = vpack.c.bf16 %v414_v0, %v410_v56  ;;  %v255_v6 = vpop.f32.mrb[16].mxu0  ;;  %v356_v7 = vpop.f32.mrb[16].mxu1 }
 0x106   :  { %v256_v8 = vadd.f32 %v255_v6, %v1907_v12  ;;  %v357_v9 = vadd.f32 %v356_v7, %v1909_v13  ;;  %v257_v10 = vpop.f32.mrb[17].mxu0  ;;  %v358_v11 = vpop.f32.mrb[17].mxu1 }
 0x107   :  { %v258_v16 = vadd.f32 %v257_v10, %v1911_v14  ;;  %v359_v17 = vadd.f32 %v358_v11, %v1913_v15  ;;  %v259_v18 = vpop.f32.mrb[18].mxu0  ;;  %v360_v19 = vpop.f32.mrb[18].mxu1  ;;  %782 = vmatprep.mubr.bf16.mxu0 %v448_v4  ;;  %870 = vmatprep.mubr.bf16.mxu1 %v450_v1 }
 0x108   :  { %v417_v20 = vmax.f32 %v357_v9, 0.0  ;;  %v260_v21 = vadd.f32 %v259_v18, %v1907_v12  ;;  %v361_v22 = vadd.f32 %v360_v19, %v1909_v13  ;;  %v261_v23 = vpop.f32.mrb[19].mxu0  ;;  %v362_v24 = vpop.f32.mrb[19].mxu1  ;;  %783 = vmatmul.mubr.bf16.gmra.mrb[40].mxu0 %v447_v2  ;;  %871 = vmatmul.mubr.bf16.gmra.mrb[40].mxu1 %v449_v3  ;;  %v415_v28 = vmax.f32 %v256_v8, 0.0 }
 0x109   :  { %v418_v25 = vmax.f32 %v359_v17, 0.0  ;;  %v262_v26 = vadd.f32 %v261_v23, %v1911_v14  ;;  %v363_v27 = vadd.f32 %v362_v24, %v1913_v15  ;;  %v416_v31 = vmax.f32 %v258_v16, 0.0 }
 0x10a   :  { %v419_v29 = vmax.f32 %v260_v21, 0.0  ;;  %v421_v30 = vmax.f32 %v361_v22, 0.0 }
 0x10b   :  { %v420_v32 = vmax.f32 %v262_v26, 0.0  ;;  %v422_v33 = vmax.f32 %v363_v27, 0.0  ;;  %v1973_v26 = vld [vmem:[%s2286_s4] ss:$0 sm:$0xff] }
 0x10c   :  { %v451_v34 = vpack.c.bf16 %v419_v29, %v415_v28  ;;  %v453_v35 = vpack.c.bf16 %v421_v30, %v417_v20 }
 0x10d   :  { %v452_v36 = vpack.c.bf16 %v420_v32, %v416_v31  ;;  %v454_v37 = vpack.c.bf16 %v422_v33, %v418_v25  ;;  %v265_v38 = vpop.f32.mrb[20].mxu0  ;;  %v366_v39 = vpop.f32.mrb[20].mxu1 }
 0x10e   :  { %v266_v40 = vadd.f32 %v265_v38, %v1907_v12  ;;  %v367_v41 = vadd.f32 %v366_v39, %v1909_v13  ;;  %v267_v42 = vpop.f32.mrb[21].mxu0  ;;  %v368_v43 = vpop.f32.mrb[21].mxu1 }
 0x10f   :  { %v268_v44 = vadd.f32 %v267_v42, %v1911_v14  ;;  %v369_v45 = vadd.f32 %v368_v43, %v1913_v15  ;;  %v269_v46 = vpop.f32.mrb[22].mxu0  ;;  %v370_v47 = vpop.f32.mrb[22].mxu1  ;;  %790 = vmatprep.mubr.bf16.mxu0 %v452_v36  ;;  %878 = vmatprep.mubr.bf16.mxu1 %v454_v37 }
 0x110   :  { %v425_v48 = vmax.f32 %v367_v41, 0.0  ;;  %v270_v49 = vadd.f32 %v269_v46, %v1907_v12  ;;  %v371_v50 = vadd.f32 %v370_v47, %v1909_v13  ;;  %v271_v51 = vpop.f32.mrb[23].mxu0  ;;  %v372_v52 = vpop.f32.mrb[23].mxu1  ;;  %791 = vmatmul.mubr.bf16.gmra.mrb[44].mxu0 %v451_v34  ;;  %879 = vmatmul.mubr.bf16.gmra.mrb[44].mxu1 %v453_v35  ;;  %v423_v56 = vmax.f32 %v266_v40, 0.0 }
 0x111   :  { %v426_v53 = vmax.f32 %v369_v45, 0.0  ;;  %v272_v54 = vadd.f32 %v271_v51, %v1911_v14  ;;  %v373_v55 = vadd.f32 %v372_v52, %v1913_v15  ;;  %v424_v59 = vmax.f32 %v268_v44, 0.0 }
 0x112   :  { %v427_v57 = vmax.f32 %v270_v49, 0.0  ;;  %v429_v58 = vmax.f32 %v371_v50, 0.0 }
 0x113   :  { %v428_v60 = vmax.f32 %v272_v54, 0.0  ;;  %v430_v61 = vmax.f32 %v373_v55, 0.0 }
 0x114   :  { %v455_v62 = vpack.c.bf16 %v427_v57, %v423_v56  ;;  %v457_v63 = vpack.c.bf16 %v429_v58, %v425_v48 }
 0x115   :  { %v456_v0 = vpack.c.bf16 %v428_v60, %v424_v59  ;;  %v458_v2 = vpack.c.bf16 %v430_v61, %v426_v53  ;;  %v275_v3 = vpop.f32.mrb[24].mxu0  ;;  %v376_v4 = vpop.f32.mrb[24].mxu1 }
 0x116   :  { %v276_v1 = vadd.f32 %v275_v3, %v1907_v12  ;;  %v277_v6 = vpop.f32.mrb[25].mxu0  ;;  %v377_v7 = vadd.f32 %v376_v4, %v1909_v13  ;;  %v378_v8 = vpop.f32.mrb[25].mxu1 }
 0x117   :  { %v278_v9 = vadd.f32 %v277_v6, %v1911_v14  ;;  %v279_v10 = vpop.f32.mrb[26].mxu0  ;;  %v379_v11 = vadd.f32 %v378_v8, %v1913_v15  ;;  %798 = vmatprep.mubr.bf16.mxu0 %v456_v0  ;;  %886 = vmatprep.mubr.bf16.mxu1 %v458_v2  ;;  %v380_v16 = vpop.f32.mrb[26].mxu1  ;;  %v1968_v15 = vand.u32 127, %v59_v5 }
 0x118   :  { %v433_v17 = vmax.f32 %v377_v7, 0.0  ;;  %v280_v18 = vpop.f32.mrb[27].mxu0  ;;  %799 = vmatmul.mubr.bf16.gmra.mrb[48].mxu0 %v455_v62  ;;  %887 = vmatmul.mubr.bf16.gmra.mrb[48].mxu1 %v457_v63  ;;  %v381_v19 = vpop.f32.mrb[27].mxu1  ;;  %v431_v12 = vmax.f32 %v276_v1, 0.0 }
 0x119   :  { %v432_v20 = vmax.f32 %v278_v9, 0.0  ;;  %v434_v21 = vmax.f32 %v379_v11, 0.0  ;;  %vm908_vm1 = vcmp.ge.s32.totalorder %v1968_v15, 37  ;;  %vm909_vm2 = vcmp.lt.s32.totalorder %v1968_v15, 49 }
 0x11a   :  { %v461_v13 = vpack.c.bf16 %v433_v17, %v433_v17  ;;  %v459_v14 = vpack.c.bf16 %v431_v12, %v431_v12  ;;  %vm1978_vm3 = vmand %vm908_vm1, %vm909_vm2  ;;  %vm905_vm4 = vcmp.ge.s32.totalorder %v1968_v15, 8  ;;  %vm906_vm5 = vcmp.lt.s32.totalorder %v1968_v15, 37 }
 0x11b   :  { %v460_v22 = vpack.c.bf16 %v432_v20, %v432_v20  ;;  %v462_v23 = vpack.c.bf16 %v434_v21, %v434_v21  ;;  %vm904_vm6 = vcmp.lt.s32.totalorder %v1968_v15, 8  ;;  %vm2163_vm7 = vmand %vm905_vm4, %vm906_vm5 }
 0x11d   :  { %806 = vmatprep.mubr.bf16.mxu0 %v460_v22  ;;  %894 = vmatprep.mubr.bf16.mxu1 %v462_v23 }
 0x120   :  { %807 = vmatmul.mubr.bf16.gmra.mrb[52].mxu0 %v459_v14  ;;  %895 = vmatmul.mubr.bf16.gmra.mrb[52].mxu1 %v461_v13 }
 0x1c3   :  { %v1400_v24 = vpop.f32.mrb[28].mxu0  ;;  %v1458_v25 = vpop.f32.mrb[28].mxu1 }
 0x1c4   :  { %v1401_v27 = vpop.f32.mrb[29].mxu0  ;;  %v1459_v28 = vpop.f32.mrb[29].mxu1 }
 0x1c5   :  { %v1402_v29 = vadd.f32 %v1401_v27, %v1400_v24  ;;  %v1460_v30 = vadd.f32 %v1459_v28, %v1458_v25  ;;  %v1403_v31 = vpop.f32.mrb[30].mxu0  ;;  %v1461_v32 = vpop.f32.mrb[30].mxu1 }
 0x1c6   :  { %v1404_v33 = vpop.f32.mrb[31].mxu0  ;;  %v1462_v5 = vpop.f32.mrb[31].mxu1 }
 0x1c7   :  { %v761_v34 = vadd.f32 %v1402_v29, %v1973_v26  ;;  %v1405_v35 = vadd.f32 %v1404_v33, %v1403_v31  ;;  %v1463_v36 = vadd.f32 %v1462_v5, %v1461_v32 }
 0x1c9   :  { %v764_v38 = vadd.f32 %v1405_v35, %v1973_v26  ;;  %v1983_v39 = vadd.f32 %v1460_v30, %v761_v34 }
 0x1cb   :  { %v1406_v40 = vpop.f32.mrb[32].mxu0  ;;  %v1464_v41 = vpop.f32.mrb[32].mxu1  ;;  %v1988_v42 = vsel %vm1978_vm3, %v1983_v39, -1e+30  ;;  %v1990_v43 = vadd.f32 %v1463_v36, %v764_v38 }
 0x1cc   :  { %v1407_v44 = vpop.f32.mrb[33].mxu0  ;;  %v1465_v45 = vpop.f32.mrb[33].mxu1  ;;  %926 = vmax.xlane.f32.xlu0 %v1988_v42 }
 0x1cd   :  { %v1408_v46 = vadd.f32 %v1407_v44, %v1406_v40  ;;  %v1466_v47 = vadd.f32 %v1465_v45, %v1464_v41  ;;  %v1409_v48 = vpop.f32.mrb[34].mxu0  ;;  %v1467_v49 = vpop.f32.mrb[34].mxu1  ;;  %v1997_v55 = vsel %vm1978_vm3, %v1990_v43, -1e+30 }
 0x1ce   :  { %v1410_v50 = vpop.f32.mrb[35].mxu0  ;;  %v1468_v51 = vpop.f32.mrb[35].mxu1 }
 0x1cf   :  { %v769_v52 = vadd.f32 %v1408_v46, %v1973_v26  ;;  %v1411_v53 = vadd.f32 %v1410_v50, %v1409_v48  ;;  %v1469_v54 = vadd.f32 %v1468_v51, %v1467_v49 }
 0x1d0   :  { %928 = vmax.xlane.f32.xlu0 %v1997_v55 }
 0x1d1   :  { %v772_v56 = vadd.f32 %v1411_v53, %v1973_v26  ;;  %v2001_v57 = vadd.f32 %v1466_v47, %v769_v52 }
 0x1d3   :  { %v1412_v58 = vpop.f32.mrb[36].mxu0  ;;  %v1470_v59 = vpop.f32.mrb[36].mxu1  ;;  %v2006_v60 = vsel %vm1978_vm3, %v2001_v57, -1e+30  ;;  %v2008_v61 = vadd.f32 %v1469_v54, %v772_v56 }
 0x1d4   :  { %v1413_v62 = vpop.f32.mrb[37].mxu0  ;;  %v1471_v63 = vpop.f32.mrb[37].mxu1  ;;  %930 = vmax.xlane.f32.xlu1 %v2006_v60 }
 0x1d5   :  { %v1414_v0 = vadd.f32 %v1413_v62, %v1412_v58  ;;  %v1472_v2 = vadd.f32 %v1471_v63, %v1470_v59  ;;  %v1415_v3 = vpop.f32.mrb[38].mxu0  ;;  %v1473_v4 = vpop.f32.mrb[38].mxu1  ;;  %v2015_v10 = vsel %vm1978_vm3, %v2008_v61, -1e+30 }
 0x1d6   :  { %v1416_v1 = vpop.f32.mrb[39].mxu0  ;;  %v1474_v6 = vpop.f32.mrb[39].mxu1 }
 0x1d7   :  { %v777_v7 = vadd.f32 %v1414_v0, %v1973_v26  ;;  %v1417_v8 = vadd.f32 %v1416_v1, %v1415_v3  ;;  %v1475_v9 = vadd.f32 %v1474_v6, %v1473_v4 }
 0x1d8   :  { %932 = vmax.xlane.f32.xlu1 %v2015_v10 }
 0x1d9   :  { %v780_v11 = vadd.f32 %v1417_v8, %v1973_v26  ;;  %v2019_v16 = vadd.f32 %v1472_v2, %v777_v7 }
 0x1db   :  { %v1418_v17 = vpop.f32.mrb[40].mxu0  ;;  %v1476_v18 = vpop.f32.mrb[40].mxu1  ;;  %v2024_v19 = vsel %vm1978_vm3, %v2019_v16, -1e+30  ;;  %v2026_v20 = vadd.f32 %v1475_v9, %v780_v11 }
 0x1dc   :  { %v1419_v21 = vpop.f32.mrb[41].mxu0  ;;  %v1477_v12 = vpop.f32.mrb[41].mxu1  ;;  %934 = vmax.xlane.f32.xlu0 %v2024_v19 }
 0x1dd   :  { %v1420_v22 = vadd.f32 %v1419_v21, %v1418_v17  ;;  %v1478_v23 = vadd.f32 %v1477_v12, %v1476_v18  ;;  %v1421_v13 = vpop.f32.mrb[42].mxu0  ;;  %v1479_v14 = vpop.f32.mrb[42].mxu1  ;;  %v2032_v24 = vsel %vm1978_vm3, %v2026_v20, -1e+30 }
 0x1de   :  { %v1422_v25 = vpop.f32.mrb[43].mxu0  ;;  %v1480_v27 = vpop.f32.mrb[43].mxu1  ;;  %936 = vmax.xlane.f32.xlu1 %v2032_v24 }
 0x1df   :  { %v785_v28 = vadd.f32 %v1420_v22, %v1973_v26  ;;  %v1423_v29 = vadd.f32 %v1422_v25, %v1421_v13  ;;  %v1481_v30 = vadd.f32 %v1480_v27, %v1479_v14 }
 0x1e1   :  { %v788_v31 = vadd.f32 %v1423_v29, %v1973_v26  ;;  %v2037_v32 = vadd.f32 %v1478_v23, %v785_v28 }
 0x1e3   :  { %v1424_v33 = vpop.f32.mrb[44].mxu0  ;;  %v1482_v5 = vpop.f32.mrb[44].mxu1  ;;  %v2042_v34 = vsel %vm1978_vm3, %v2037_v32, -1e+30  ;;  %v2044_v35 = vadd.f32 %v1481_v30, %v788_v31 }
 0x1e4   :  { %v1425_v36 = vpop.f32.mrb[45].mxu0  ;;  %v1483_v38 = vpop.f32.mrb[45].mxu1  ;;  %938 = vmax.xlane.f32.xlu0 %v2042_v34 }
 0x1e5   :  { %v1426_v40 = vadd.f32 %v1425_v36, %v1424_v33  ;;  %v1484_v41 = vadd.f32 %v1483_v38, %v1482_v5  ;;  %v1427_v44 = vpop.f32.mrb[46].mxu0  ;;  %v1485_v45 = vpop.f32.mrb[46].mxu1  ;;  %v2050_v46 = vsel %vm1978_vm3, %v2044_v35, -1e+30 }
 0x1e6   :  { %v1428_v47 = vpop.f32.mrb[47].mxu0  ;;  %v1486_v48 = vpop.f32.mrb[47].mxu1  ;;  %940 = vmax.xlane.f32.xlu1 %v2050_v46 }
 0x1e7   :  { %v793_v49 = vadd.f32 %v1426_v40, %v1973_v26  ;;  %v1429_v50 = vadd.f32 %v1428_v47, %v1427_v44  ;;  %v1487_v51 = vadd.f32 %v1486_v48, %v1485_v45 }
 0x1e9   :  { %v796_v52 = vadd.f32 %v1429_v50, %v1973_v26  ;;  %v2055_v53 = vadd.f32 %v1484_v41, %v793_v49 }
 0x1eb   :  { %v1430_v54 = vpop.f32.mrb[48].mxu0  ;;  %v1488_v56 = vpop.f32.mrb[48].mxu1  ;;  %v2060_v58 = vsel %vm1978_vm3, %v2055_v53, -1e+30  ;;  %v2062_v59 = vadd.f32 %v1487_v51, %v796_v52 }
 0x1ec   :  { %v1431_v62 = vpop.f32.mrb[49].mxu0  ;;  %v1489_v63 = vpop.f32.mrb[49].mxu1  ;;  %942 = vmax.xlane.f32.xlu0 %v2060_v58 }
 0x1ed   :  { %v1432_v0 = vadd.f32 %v1431_v62, %v1430_v54  ;;  %v1490_v2 = vadd.f32 %v1489_v63, %v1488_v56  ;;  %v1433_v3 = vpop.f32.mrb[50].mxu0  ;;  %v1491_v4 = vpop.f32.mrb[50].mxu1  ;;  %v2068_v1 = vsel %vm1978_vm3, %v2062_v59, -1e+30 }
 0x1ee   :  { %v1434_v6 = vpop.f32.mrb[51].mxu0  ;;  %v1492_v7 = vpop.f32.mrb[51].mxu1  ;;  %944 = vmax.xlane.f32.xlu1 %v2068_v1 }
 0x1ef   :  { %v801_v8 = vadd.f32 %v1432_v0, %v1973_v26  ;;  %v1435_v9 = vadd.f32 %v1434_v6, %v1433_v3  ;;  %v1493_v11 = vadd.f32 %v1492_v7, %v1491_v4 }
 0x1f1   :  { %v804_v17 = vadd.f32 %v1435_v9, %v1973_v26  ;;  %v2073_v18 = vadd.f32 %v1490_v2, %v801_v8 }
 0x1f3   :  { %v1436_v21 = vpop.f32.mrb[52].mxu0  ;;  %v1494_v12 = vpop.f32.mrb[52].mxu1  ;;  %v2078_v22 = vsel %vm1978_vm3, %v2073_v18, -1e+30  ;;  %v2080_v23 = vadd.f32 %v1493_v11, %v804_v17 }
 0x1f4   :  { %v1437_v13 = vpop.f32.mrb[53].mxu0  ;;  %v1495_v14 = vpop.f32.mrb[53].mxu1  ;;  %946 = vmax.xlane.f32.xlu0 %v2078_v22 }
 0x1f5   :  { %v1438_v25 = vadd.f32 %v1437_v13, %v1436_v21  ;;  %v1496_v27 = vadd.f32 %v1495_v14, %v1494_v12  ;;  %v1439_v28 = vpop.f32.mrb[54].mxu0  ;;  %v1497_v29 = vpop.f32.mrb[54].mxu1  ;;  %v2086_v30 = vsel %vm1978_vm3, %v2080_v23, -1e+30 }
 0x1f6   :  { %v1440_v31 = vpop.f32.mrb[55].mxu0  ;;  %v1498_v33 = vpop.f32.mrb[55].mxu1  ;;  %948 = vmax.xlane.f32.xlu1 %v2086_v30 }
 0x1f7   :  { %v809_v5 = vadd.f32 %v1438_v25, %v1973_v26 }
 0x1f9   :  { %v2090_v36 = vadd.f32 %v1496_v27, %v809_v5 }
 0x1fb   :  { %v2095_v38 = vsel %vm1978_vm3, %v2090_v36, -1e+30 }
 0x1fc   :  { %950 = vmax.xlane.f32.xlu0 %v2095_v38 }
 0x259   :  { %v927_v40 = vpop.xlane.xlu0 %926 }
 0x25a   :  { %v952_v41 = vsub.f32 %v1988_v42, %v927_v40 }
 0x25c   :  { %v965_v44 = vmul.f32 1.442695, %v952_v41 }
 0x25d   :  { %v929_v45 = vpop.xlane.xlu0 %928 }
 0x25e   :  { %1557 = vpow2.f32 %v965_v44  ;;  %v953_v47 = vsub.f32 %v1997_v55, %v929_v45 }
 0x260   :  { %v967_v48 = vmul.f32 1.442695, %v953_v47  ;;  %v1310_v47 = vmul.f32 -1.442695, %v1983_v39 }
 0x261   :  { %v931_v49 = vpop.xlane.xlu1 %930 }
 0x262   :  { %1559 = vpow2.f32 %v967_v48  ;;  %v954_v26 = vsub.f32 %v2006_v60, %v931_v49  ;;  %v1312_v48 = vmul.f32 -1.442695, %v2001_v57  ;;  %v1313_v49 = vmul.f32 -1.442695, %v2008_v61 }
 0x263   :  { %v1317_v61 = vmul.f32 -1.442695, %v2044_v35  ;;  %v1319_v35 = vmul.f32 -1.442695, %v2062_v59 }
 0x264   :  { %v969_v50 = vmul.f32 1.442695, %v954_v26 }
 0x265   :  { %v933_v51 = vpop.xlane.xlu1 %932 }
 0x266   :  { %1561 = vpow2.f32 %v969_v50  ;;  %v955_v52 = vsub.f32 %v2015_v10, %v933_v51  ;;  %v1314_v50 = vmul.f32 -1.442695, %v2019_v16 }
 0x268   :  { %v2102_v54 = vpop.eup %1557  ;;  %v971_v56 = vmul.f32 1.442695, %v955_v52 }
 0x269   :  { %991 = vadd.xlane.f32.xlu1 %v2102_v54  ;;  %v935_v42 = vpop.xlane.xlu0 %934 }
 0x26a   :  { %1563 = vpow2.f32 %v971_v56  ;;  %v956_v62 = vsub.f32 %v2024_v19, %v935_v42  ;;  %v1315_v56 = vmul.f32 -1.442695, %v2026_v20 }
 0x26b   :  { %v937_v55 = vpop.xlane.xlu1 %936 }
 0x26c   :  { %v2106_v63 = vpop.eup %1559  ;;  %v973_v0 = vmul.f32 1.442695, %v956_v62  ;;  %v957_v60 = vsub.f32 %v2032_v24, %v937_v55 }
 0x26d   :  { %993 = vadd.xlane.f32.xlu0 %v2106_v63 }
 0x26e   :  { %1565 = vpow2.f32 %v973_v0  ;;  %v975_v2 = vmul.f32 1.442695, %v957_v60 }
 0x270   :  { %v2110_v10 = vpop.eup %1561  ;;  %1567 = vpow2.f32 %v975_v2 }
 0x271   :  { %995 = vadd.xlane.f32.xlu1 %v2110_v10  ;;  %v939_v3 = vpop.xlane.xlu0 %938 }
 0x272   :  { %v958_v4 = vsub.f32 %v2042_v34, %v939_v3 }
 0x273   :  { %v941_v6 = vpop.xlane.xlu1 %940 }
 0x274   :  { %v2114_v19 = vpop.eup %1563  ;;  %v977_v7 = vmul.f32 1.442695, %v958_v4  ;;  %v959_v8 = vsub.f32 %v2050_v46, %v941_v6  ;;  %v1318_v6 = vmul.f32 -1.442695, %v2055_v53 }
 0x275   :  { %997 = vadd.xlane.f32.xlu0 %v2114_v19 }
 0x276   :  { %1569 = vpow2.f32 %v977_v7  ;;  %v979_v24 = vmul.f32 1.442695, %v959_v8 }
 0x278   :  { %v2118_v9 = vpop.eup %1565  ;;  %1571 = vpow2.f32 %v979_v24 }
 0x279   :  { %999 = vadd.xlane.f32.xlu1 %v2118_v9  ;;  %v943_v11 = vpop.xlane.xlu0 %942 }
 0x27a   :  { %v2121_v17 = vpop.eup %1567  ;;  %v960_v34 = vsub.f32 %v2060_v58, %v943_v11 }
 0x27b   :  { %v945_v21 = vpop.xlane.xlu1 %944  ;;  %1001 = vadd.xlane.f32.xlu0 %v2121_v17 }
 0x27c   :  { %v981_v12 = vmul.f32 1.442695, %v960_v34  ;;  %v961_v46 = vsub.f32 %v2068_v1, %v945_v21 }
 0x27e   :  { %1573 = vpow2.f32 %v981_v12  ;;  %v983_v13 = vmul.f32 1.442695, %v961_v46 }
 0x280   :  { %v2126_v14 = vpop.eup %1569  ;;  %1575 = vpow2.f32 %v983_v13 }
 0x281   :  { %1003 = vadd.xlane.f32.xlu1 %v2126_v14  ;;  %v947_v25 = vpop.xlane.xlu0 %946 }
 0x282   :  { %v2129_v27 = vpop.eup %1571  ;;  %v962_v28 = vsub.f32 %v2078_v22, %v947_v25 }
 0x283   :  { %v949_v29 = vpop.xlane.xlu1 %948  ;;  %1005 = vadd.xlane.f32.xlu0 %v2129_v27 }
 0x284   :  { %v985_v58 = vmul.f32 1.442695, %v962_v28  ;;  %v963_v31 = vsub.f32 %v2086_v30, %v949_v29 }
 0x286   :  { %1577 = vpow2.f32 %v985_v58  ;;  %v987_v1 = vmul.f32 1.442695, %v963_v31 }
 0x288   :  { %v2134_v33 = vpop.eup %1573  ;;  %1579 = vpow2.f32 %v987_v1 }
 0x289   :  { %1007 = vadd.xlane.f32.xlu1 %v2134_v33  ;;  %v951_v5 = vpop.xlane.xlu0 %950 }
 0x28a   :  { %v2137_v40 = vpop.eup %1575  ;;  %v964_v41 = vsub.f32 %v2095_v38, %v951_v5  ;;  %v1311_v38 = vmul.f32 -1.442695, %v1990_v43  ;;  %v1316_v43 = vmul.f32 -1.442695, %v2037_v32 }
 0x28b   :  { %1009 = vadd.xlane.f32.xlu0 %v2137_v40 }
 0x28c   :  { %v989_v22 = vmul.f32 1.442695, %v964_v41 }
 0x28e   :  { %1581 = vpow2.f32 %v989_v22  ;;  %v1320_v22 = vmul.f32 -1.442695, %v2073_v18 }
 0x28f   :  { %1583 = vpow2.f32 %v1310_v47 }
 0x290   :  { %v2141_v44 = vpop.eup %1577  ;;  %1585 = vpow2.f32 %v1311_v38  ;;  %v1321_v38 = vmul.f32 -1.442695, %v2080_v23 }
 0x291   :  { %1011 = vadd.xlane.f32.xlu1 %v2141_v44  ;;  %1587 = vpow2.f32 %v1312_v48 }
 0x292   :  { %v2144_v30 = vpop.eup %1579  ;;  %1589 = vpow2.f32 %v1313_v49 }
 0x293   :  { %1013 = vadd.xlane.f32.xlu0 %v2144_v30  ;;  %1591 = vpow2.f32 %v1314_v50 }
 0x298   :  { %v2147_v45 = vpop.eup %1581 }
 0x299   :  { %1015 = vadd.xlane.f32.xlu1 %v2147_v45  ;;  %v1584_v26 = vpop.eup %1583 }
 0x29a   :  { %v1069_v51 = vadd.f32 1.0, %v1584_v26  ;;  %v1586_v52 = vpop.eup %1585 }
 0x29b   :  { %v1070_v39 = vadd.f32 1.0, %v1586_v52  ;;  %v1588_v42 = vpop.eup %1587 }
 0x29c   :  { %1593 = vrcp.f32 %v1069_v51  ;;  %v1071_v57 = vadd.f32 1.0, %v1588_v42  ;;  %v1590_v55 = vpop.eup %1589 }
 0x29d   :  { %1595 = vpow2.f32 %v1315_v56  ;;  %v1592_v0 = vpop.eup %1591  ;;  %v1072_v20 = vadd.f32 1.0, %v1590_v55 }
 0x29e   :  { %v1073_v4 = vadd.f32 1.0, %v1592_v0  ;;  %v1322_v0 = vmul.f32 -1.442695, %v2090_v36 }
 0x2a6   :  { %v1594_v2 = vpop.eup %1593 }
 0x2a7   :  { %v1596_v3 = vpop.eup %1595  ;;  %v1136_v53 = vsel %vm904_vm6, %v1594_v2, 0.0 }
 0x2a8   :  { %v1074_v21 = vadd.f32 1.0, %v1596_v3 }
 0x2f6   :  { %v992_v62 = vpop.xlane.xlu1 %991 }
 0x2f7   :  { %1597 = vrcp.f32 %v992_v62 }
 0x2f8   :  { %1599 = vrcp.f32 %v1070_v39 }
 0x2f9   :  { %1601 = vpow2.f32 %v1316_v43 }
 0x2fa   :  { %v994_v16 = vpop.xlane.xlu0 %993 }
 0x2fb   :  { %1603 = vrcp.f32 %v994_v16 }
 0x2fc   :  { %1605 = vrcp.f32 %v1071_v57 }
 0x2fd   :  { %1607 = vpow2.f32 %v1317_v61 }
 0x2fe   :  { %v996_v60 = vpop.xlane.xlu1 %995 }
 0x2ff   :  { %1609 = vrcp.f32 %v996_v60 }
 0x300   :  { %1611 = vrcp.f32 %v1072_v20 }
 0x301   :  { %v1598_v32 = vpop.eup %1597 }
 0x302   :  { %v1121_v7 = vmul.f32 %v1598_v32, %v1594_v2  ;;  %v998_v8 = vpop.xlane.xlu0 %997  ;;  %v1600_v24 = vpop.eup %1599  ;;  %v1108_v59 = vmul.f32 %v1598_v32, %v2102_v54 }
 0x303   :  { %1613 = vrcp.f32 %v998_v8  ;;  %v1602_v34 = vpop.eup %1601  ;;  %v1137_v58 = vsel %vm904_vm6, %v1600_v24, 0.0 }
 0x304   :  { %1615 = vrcp.f32 %v1073_v4  ;;  %v1151_v46 = vsel %vm2163_vm7, %v1121_v7, %v1136_v53  ;;  %v1075_v1 = vadd.f32 1.0, %v1602_v34 }
 0x305   :  { %v1604_v12 = vpop.eup %1603  ;;  %1617 = vpow2.f32 %v1318_v6 }
 0x306   :  { %1619 = vpow2.f32 %v1319_v35  ;;  %v1109_v13 = vmul.f32 %v1604_v12, %v2106_v63  ;;  %v1122_v25 = vmul.f32 %v1604_v12, %v1600_v24  ;;  %v1000_v28 = vpop.xlane.xlu1 %999  ;;  %v1606_v29 = vpop.eup %1605  ;;  %v1164_v63 = vsel %vm1978_vm3, %v1108_v59, %v1151_v46 }
 0x307   :  { %1621 = vrcp.f32 %v1000_v28  ;;  %v1608_v31 = vpop.eup %1607  ;;  %v1138_v18 = vsel %vm904_vm6, %v1606_v29, 0.0 }
 0x308   :  { %1623 = vrcp.f32 %v1074_v21  ;;  %v1152_v5 = vsel %vm2163_vm7, %v1122_v25, %v1137_v58  ;;  %v1002_v54 = vpop.xlane.xlu0 %1001  ;;  %v1076_v50 = vadd.f32 1.0, %v1608_v31 }
 0x309   :  { %v1610_v41 = vpop.eup %1609  ;;  %v1165_v47 = vsel %vm1978_vm3, %v1109_v13, %v1152_v5  ;;  %1625 = vrcp.f32 %v1002_v54 }
 0x30a   :  { %v1352_v48 = vpack.c.bf16 %v1165_v47, %v1164_v63  ;;  %v1123_v49 = vmul.f32 %v1610_v41, %v1606_v29  ;;  %v1612_v26 = vpop.eup %1611  ;;  %1627 = vrcp.f32 %v1075_v1  ;;  %v1110_v52 = vmul.f32 %v1610_v41, %v2110_v10 }
 0x30b   :  { %1629 = vpow2.f32 %v1320_v22  ;;  %v1139_v57 = vsel %vm904_vm6, %v1612_v26, 0.0 }
 0x30c   :  { %1353 = vst [vmem:[%s2287_s5] sm:$0xff] %v1352_v48   ;;  %1631 = vpow2.f32 %v1321_v38  ;;  %v1153_v23 = vsel %vm2163_vm7, %v1123_v49, %v1138_v18 }
 0x30d   :  { %v1614_v51 = vpop.eup %1613  ;;  %v1166_v20 = vsel %vm1978_vm3, %v1110_v52, %v1153_v23 }
 0x30e   :  { %v1616_v56 = vpop.eup %1615  ;;  %v1111_v39 = vmul.f32 %v1614_v51, %v2114_v19  ;;  %v1124_v42 = vmul.f32 %v1614_v51, %v1612_v26  ;;  %v1004_v43 = vpop.xlane.xlu1 %1003 }
 0x30f   :  { %v1618_v62 = vpop.eup %1617  ;;  %1633 = vrcp.f32 %v1004_v43  ;;  %v1140_v6 = vsel %vm904_vm6, %v1616_v56, 0.0 }
 0x310   :  { %v1620_v61 = vpop.eup %1619  ;;  %1635 = vrcp.f32 %v1076_v50  ;;  %v1154_v16 = vsel %vm2163_vm7, %v1124_v42, %v1139_v57  ;;  %v1006_v10 = vpop.xlane.xlu0 %1005  ;;  %v1077_v2 = vadd.f32 1.0, %v1618_v62 }
 0x311   :  { %v1622_v55 = vpop.eup %1621  ;;  %v1167_v19 = vsel %vm1978_vm3, %v1111_v39, %v1154_v16  ;;  %1637 = vrcp.f32 %v1006_v10  ;;  %v1078_v7 = vadd.f32 1.0, %v1620_v61 }
 0x312   :  { %v1624_v60 = vpop.eup %1623  ;;  %v1357_v3 = vpack.c.bf16 %v1167_v19, %v1166_v20  ;;  %v1125_v4 = vmul.f32 %v1622_v55, %v1616_v56  ;;  %v1112_v35 = vmul.f32 %v1622_v55, %v2118_v9  ;;  %1639 = vpow2.f32 %v1322_v0 }
 0x313   :  { %v1626_v32 = vpop.eup %1625  ;;  %v1141_v34 = vsel %vm904_vm6, %v1624_v60, 0.0  ;;  %1641 = vrcp.f32 %v1077_v2 }
 0x314   :  { %1379 = vst [vmem:[%s2287_s5 + $0x8] sm:$0xff] %v1357_v3   ;;  %v1155_v36 = vsel %vm2163_vm7, %v1125_v4, %v1140_v6  ;;  %v1113_v8 = vmul.f32 %v1626_v32, %v2121_v17  ;;  %v1126_v24 = vmul.f32 %v1626_v32, %v1624_v60  ;;  %v1628_v21 = vpop.eup %1627 }
 0x315   :  { %v1630_v53 = vpop.eup %1629  ;;  %v1168_v59 = vsel %vm1978_vm3, %v1112_v35, %v1155_v36  ;;  %v1142_v5 = vsel %vm904_vm6, %v1628_v21, 0.0 }
 0x316   :  { %v1156_v9 = vsel %vm2163_vm7, %v1126_v24, %v1141_v34  ;;  %v1008_v12 = vpop.xlane.xlu1 %1007  ;;  %v1632_v17 = vpop.eup %1631  ;;  %v1079_v58 = vadd.f32 1.0, %v1630_v53 }
 0x317   :  { %v1169_v46 = vsel %vm1978_vm3, %v1113_v8, %v1156_v9  ;;  %1643 = vrcp.f32 %v1008_v12  ;;  %v1080_v41 = vadd.f32 1.0, %v1632_v17 }
 0x318   :  { %1645 = vrcp.f32 %v1078_v7  ;;  %v1362_v13 = vpack.c.bf16 %v1169_v46, %v1168_v59  ;;  %v1010_v25 = vpop.xlane.xlu0 %1009 }
 0x319   :  { %v1634_v28 = vpop.eup %1633  ;;  %1647 = vrcp.f32 %v1010_v25 }
 0x31a   :  { %v1636_v29 = vpop.eup %1635  ;;  %1380 = vst [vmem:[%s2287_s5 + $0x10] sm:$0xff] %v1362_v13   ;;  %v1127_v31 = vmul.f32 %v1634_v28, %v1628_v21  ;;  %v1114_v54 = vmul.f32 %v1634_v28, %v2126_v14  ;;  %1649 = vrcp.f32 %v1079_v58 }
 0x31b   :  { %v1638_v1 = vpop.eup %1637  ;;  %v1143_v38 = vsel %vm904_vm6, %v1636_v29, 0.0 }
 0x31c   :  { %v1157_v22 = vsel %vm2163_vm7, %v1127_v31, %v1142_v5  ;;  %v1115_v63 = vmul.f32 %v1638_v1, %v2129_v27  ;;  %v1128_v47 = vmul.f32 %v1638_v1, %v1636_v29  ;;  %v1640_v26 = vpop.eup %1639 }
 0x31d   :  { %v1170_v50 = vsel %vm1978_vm3, %v1114_v54, %v1157_v22  ;;  %v1642_v51 = vpop.eup %1641  ;;  %v1081_v23 = vadd.f32 1.0, %v1640_v26 }
 0x31e   :  { %v1158_v48 = vsel %vm2163_vm7, %v1128_v47, %v1143_v38  ;;  %v1012_v49 = vpop.xlane.xlu1 %1011  ;;  %v1144_v43 = vsel %vm904_vm6, %v1642_v51, 0.0 }
 0x31f   :  { %v1171_v14 = vsel %vm1978_vm3, %v1115_v63, %v1158_v48  ;;  %1651 = vrcp.f32 %v1012_v49 }
 0x320   :  { %1653 = vrcp.f32 %v1080_v41  ;;  %v1367_v27 = vpack.c.bf16 %v1171_v14, %v1170_v50  ;;  %v1014_v18 = vpop.xlane.xlu0 %1013 }
 0x321   :  { %v1644_v52 = vpop.eup %1643  ;;  %1655 = vrcp.f32 %v1014_v18 }
 0x322   :  { %v1646_v56 = vpop.eup %1645  ;;  %1381 = vst [vmem:[%s2287_s5 + $0x18] sm:$0xff] %v1367_v27   ;;  %v1129_v39 = vmul.f32 %v1644_v52, %v1642_v51  ;;  %v1116_v62 = vmul.f32 %v1644_v52, %v2134_v33  ;;  %1657 = vrcp.f32 %v1081_v23 }
 0x323   :  { %v1648_v42 = vpop.eup %1647  ;;  %v1145_v10 = vsel %vm904_vm6, %v1646_v56, 0.0 }
 0x324   :  { %v1159_v57 = vsel %vm2163_vm7, %v1129_v39, %v1144_v43  ;;  %v1117_v61 = vmul.f32 %v1648_v42, %v2137_v40  ;;  %v1130_v16 = vmul.f32 %v1648_v42, %v1646_v56  ;;  %v1650_v19 = vpop.eup %1649 }
 0x325   :  { %v1172_v20 = vsel %vm1978_vm3, %v1116_v62, %v1159_v57  ;;  %v1146_v32 = vsel %vm904_vm6, %v1650_v19, 0.0 }
 0x326   :  { %v1160_v55 = vsel %vm2163_vm7, %v1130_v16, %v1145_v10  ;;  %v1016_v0 = vpop.xlane.xlu1 %1015 }
 0x327   :  { %v1173_v33 = vsel %vm1978_vm3, %v1117_v61, %v1160_v55  ;;  %1659 = vrcp.f32 %v1016_v0 }
 0x328   :  { %v1372_v60 = vpack.c.bf16 %v1173_v33, %v1172_v20 }
 0x329   :  { %v1652_v2 = vpop.eup %1651 }
 0x32a   :  { %v1654_v40 = vpop.eup %1653  ;;  %1382 = vst [vmem:[%s2287_s5 + $0x20] sm:$0xff] %v1372_v60   ;;  %v1131_v3 = vmul.f32 %v1652_v2, %v1650_v19  ;;  %v1118_v6 = vmul.f32 %v1652_v2, %v2141_v44 }
 0x32b   :  { %v1656_v4 = vpop.eup %1655  ;;  %v1147_v8 = vsel %vm904_vm6, %v1654_v40, 0.0 }
 0x32c   :  { %v1161_v35 = vsel %vm2163_vm7, %v1131_v3, %v1146_v32  ;;  %v1119_v7 = vmul.f32 %v1656_v4, %v2144_v30  ;;  %v1132_v36 = vmul.f32 %v1656_v4, %v1654_v40  ;;  %v1658_v9 = vpop.eup %1657 }
 0x32d   :  { %v1174_v34 = vsel %vm1978_vm3, %v1118_v6, %v1161_v35  ;;  %v1148_v59 = vsel %vm904_vm6, %v1658_v9, 0.0 }
 0x32e   :  { %v1162_v24 = vsel %vm2163_vm7, %v1132_v36, %v1147_v8 }
 0x32f   :  { %v1175_v21 = vsel %vm1978_vm3, %v1119_v7, %v1162_v24 }
 0x330   :  { %v1377_v44 = vpack.c.bf16 %v1175_v21, %v1174_v34 }
 0x331   :  { %v1660_v12 = vpop.eup %1659 }
 0x332   :  { %1383 = vst [vmem:[%s2287_s5 + $0x28] sm:$0xff] %v1377_v44   ;;  %v1120_v30 = vmul.f32 %v1660_v12, %v2147_v45  ;;  %v1133_v53 = vmul.f32 %v1660_v12, %v1658_v9 }
 0x334   :  { %v1163_v46 = vsel %vm2163_vm7, %v1133_v53, %v1148_v59 }
 0x335   :  { %v1176_v17 = vsel %vm1978_vm3, %v1120_v30, %v1163_v46 }
 0x336   :  { %v1348_v13 = vpack.c.bf16 %v1176_v17, %v1176_v17 }
 0x338   :  { %1242 = vst [vmem:[%s2287_s5 + $0x30] sm:$0xf] %v1348_v13 }

</bundles_post_ra>
